<compile_context>
chip_gen: v6e
topology: v6e:2x2x1
jax: 0.10.0
libtpu: 0.0.40
codegen_flags: <defaults>
</compile_context>

<pallas_src>
import jax
import jax.numpy as jnp
from jax.experimental import pallas as pl
from jax.experimental.pallas import tpu as pltpu


def _cnn_fused_kernel(x_ref, wc_ref, bc_ref, w2_ref, b2_ref, wf_ref, bf_ref, o_ref):
    """Fused: [linear+conv1-center folded] -> relu -> conv2-center -> relu -> fc -> sigmoid."""
    # In-kernel cast of the batch tile (VPU; free under a mem-bound regime). x is read
    # from HBM exactly once, in its native dtype.
    x = x_ref[...].astype(wc_ref.dtype)

    # Folded Linear + conv1 center tap (dropout identity), f32 accumulate on MXU.
    h = jnp.dot(x, wc_ref[...], preferred_element_type=jnp.float32) + bc_ref[...]
    h = jnp.maximum(h, 0.0)                                  # ReLU (+MaxPool(k=1) identity)

    # conv2 center tap. Only the matmul operand is cast; elementwise math stays f32.
    h = jnp.dot(h.astype(w2_ref.dtype), w2_ref[...],
                preferred_element_type=jnp.float32) + b2_ref[...]
    h = jnp.maximum(h, 0.0)                                  # ReLU (+MaxPool(k=1) identity)
    # view(B, -1) and the second Dropout are no-ops in this layout / at inference.

    # fc straight into the narrow (tb, n_out) output tile: no lane padding, so HBM
    # writeback is n_out*4 bytes/row (the previous padded slab wrote 512 B/row and
    # needed a wrapper-side slice that re-read it).
    logits = jnp.dot(h.astype(wf_ref.dtype), wf_ref[...],
                     preferred_element_type=jnp.float32) + bf_ref[...]

    # Exact sigmoid via one EUP push: sigmoid(x) = 0.5*(tanh(x/2) + 1).
    o_ref[...] = (0.5 * jnp.tanh(0.5 * logits) + 0.5).astype(o_ref.dtype)


def _num_tensorcores():
    """TensorCores per JAX device (2 on megacore parts: v4 / v7x; else 1)."""
    try:
        kind = jax.devices()[0].device_kind.lower()
    except Exception:
        return 1
    return 2 if ("v4" in kind or "v7" in kind) else 1


def _pick_tb(B, num_cores=1, cap=8192):
    """Batch-tile policy.

    Single-TC parts (v5e/v6e): the grid is a sequential loop, so one big tile
    (splitting a mem-bound workload only adds ~0.35 us/step overhead, no parallelism).
    Multi-TC parts (v7x): largest tile such that the grid length is a positive multiple
    of num_cores, so dimension_semantics=('parallel',) keeps both TCs load-balanced.
    VMEM stays tiny even at tb=8192 (x tile 512 KiB, intermediates ~1 MiB), far under
    the scoped default, so no vmem_limit_bytes override is needed.
    """
    if num_cores <= 1 or B < 2 * 8 * num_cores:
        if B <= cap:
            return B
        for tb in range((cap // 8) * 8, 7, -8):
            if B % tb == 0:
                return tb
        return B
    upper = min(cap, B // num_cores)
    for tb in range((upper // 8) * 8, 7, -8):
        if B % tb == 0 and (B // tb) % num_cores == 0:
            return tb
    return B  # fallback: single tile


def fold_params(params, compute_dtype=jnp.float32):
    """One-time parameter prep (fold + transpose + dtype). Compute once and reuse
    across calls -- do NOT rebuild per forward."""
    wl, bl, w1, b1, w2, b2, wf, bf = params
    d_model, input_dim = wl.shape
    # The PyTorch module only runs when d_model == input_dim (conv1 expects
    # in_channels=input_dim but receives d_model channels).
    assert d_model == input_dim, "CNNModel forward requires d_model == input_dim"

    w1c = w1[:, :, 1].T                                    # (d_model, n_hidden) center tap
    wc = (wl.T @ w1c).astype(compute_dtype)                # folded Linear+conv1 weight
    bc = (bl @ w1c + b1).reshape(1, -1).astype(jnp.float32)
    w2c = w2[:, :, 1].T.astype(compute_dtype)              # (n_hidden, n_hidden) center tap
    b22 = b2.reshape(1, -1).astype(jnp.float32)
    wf_t = wf.T.astype(compute_dtype)                      # (n_hidden, n_out) -- unpadded
    bf2 = bf.reshape(1, -1).astype(jnp.float32)
    return (wc, bc, w2c, b22, wf_t, bf2)


def cnn_forward(x, folded, *, tb=None):
    """x: (B, input_dim) in its native dtype (cast to MXU operand dtype happens in-kernel).
    folded: output of fold_params. Returns (B, n_out) f32 sigmoid probabilities."""
    wc, bc, w2c, b22, wf_t, bf2 = folded
    B, input_dim = x.shape
    assert wc.shape[0] == input_dim
    n_out = wf_t.shape[1]

    if tb is None:
        tb = _pick_tb(B, _num_tensorcores())
    assert B % tb == 0
    grid = (B // tb,)

    def full_spec(arr):
        nd = arr.ndim
        return pl.BlockSpec(arr.shape, lambda i, _nd=nd: (0,) * _nd)

    return pl.pallas_call(
        _cnn_fused_kernel,
        out_shape=jax.ShapeDtypeStruct((B, n_out), jnp.float32),
        grid=grid,
        in_specs=[
            pl.BlockSpec((tb, input_dim), lambda i: (i, 0)),   # x: tiled over batch
            full_spec(wc), full_spec(bc),                      # grid-invariant weights
            full_spec(w2c), full_spec(b22),
            full_spec(wf_t), full_spec(bf2),
        ],
        out_specs=pl.BlockSpec((tb, n_out), lambda i: (i, 0)),  # unpadded output tile
        compiler_params=pltpu.CompilerParams(dimension_semantics=("parallel",)),
    )(x, wc, bc, w2c, b22, wf_t, bf2)


def _init_params(key, input_dim, d_model, n_hidden, n_out):
    """Deterministic uniform init (synthetic, not a checkpoint)."""
    ks = jax.random.split(key, 8)

    def u(k, shape, fan_in):
        bound = (1.0 / fan_in) ** 0.5
        return jax.random.uniform(k, shape, jnp.float32, -bound, bound)

    wl = u(ks[0], (d_model, input_dim), input_dim)
    bl = u(ks[1], (d_model,), input_dim)
    w1 = u(ks[2], (n_hidden, input_dim, 3), input_dim * 3)
    b1 = u(ks[3], (n_hidden,), input_dim * 3)
    w2 = u(ks[4], (n_hidden, n_hidden, 3), n_hidden * 3)
    b2 = u(ks[5], (n_hidden,), n_hidden * 3)
    wf = u(ks[6], (n_out, n_hidden), n_hidden)
    bf = u(ks[7], (n_out,), n_hidden)
    return (wl, bl, w1, b1, w2, b2, wf, bf)


def _reference_forward(x, params):
    """Pure-JAX reference replicating the PyTorch eval-mode forward exactly."""
    wl, bl, w1, b1, w2, b2, wf, bf = params
    out = x @ wl.T + bl                                  # linear (+ dropout identity)
    out = out[:, :, None]                                # unsqueeze(2): (B, C, 1)

    def conv1d(o, w, b):                                 # Conv1d k=3, pad=1 on L=1
        op = jnp.pad(o, ((0, 0), (0, 0), (1, 1)))        # (B, Cin, 3)
        y = jnp.einsum("bct,oct->bo", op, w) + b
        return y[:, :, None]

    out = jnp.maximum(conv1d(out, w1, b1), 0.0)          # conv1 + relu (+ maxpool id)
    out = jnp.maximum(conv1d(out, w2, b2), 0.0)          # conv2 + relu (+ maxpool id)
    out = out.reshape(out.shape[0], -1)                  # view (+ dropout identity)
    out = out @ wf.T + bf
    return jax.nn.sigmoid(out)


if __name__ == "__main__":
    B, input_dim, d_model, n_hidden, n_out = 8, 16, 16, 32, 4  # d_model must == input_dim
    key = jax.random.PRNGKey(0)
    kx, kp = jax.random.split(key)
    x = jax.random.normal(kx, (B, input_dim), jnp.float32)
    params = _init_params(kp, input_dim, d_model, n_hidden, n_out)

    ref = _reference_forward(x, params)

    # f32 MXU-operand path (exact tanh-based sigmoid -> tight match to the reference).
    folded_f32 = fold_params(params, jnp.float32)
    fwd_f32 = jax.jit(lambda xx: cnn_forward(xx, folded_f32))   # params folded once, jitted
    out_f32 = jax.block_until_ready(fwd_f32(x))
    assert out_f32.shape == (B, n_out)
    assert jnp.allclose(out_f32, ref, atol=1e-4, rtol=1e-4), "f32 path mismatch vs reference"

    # bf16 MXU-operand path (recommended on v6e/v7x, safe on v5e since only matmul
    # operands are bf16; elementwise/bias/sigmoid math stays f32). Looser tolerance.
    folded_bf16 = fold_params(params, jnp.bfloat16)
    fwd_bf16 = jax.jit(lambda xx: cnn_forward(xx, folded_bf16))
    out_bf16 = jax.block_until_ready(fwd_bf16(x))
    assert out_bf16.shape == (B, n_out)
    assert jnp.allclose(out_bf16, ref, atol=5e-2, rtol=5e-2), "bf16 path mismatch vs reference"

    print("KERNEL_OK")
</pallas_src>

<mosaic_0001>
module attributes {stable_mosaic.version = 11 : i64} {
  func.func @_cnn_fused_kernel(%arg0: i32, %arg1: memref<8x16xf32, #tpu.memory_space<vmem>>, %arg2: memref<16x32xf32, #tpu.memory_space<vmem>>, %arg3: memref<1x32xf32, #tpu.memory_space<vmem>>, %arg4: memref<32x32xf32, #tpu.memory_space<vmem>>, %arg5: memref<1x32xf32, #tpu.memory_space<vmem>>, %arg6: memref<32x4xf32, #tpu.memory_space<vmem>>, %arg7: memref<1x4xf32, #tpu.memory_space<vmem>>, %arg8: memref<8x4xf32, #tpu.memory_space<vmem>>) attributes {dimension_semantics = [#tpu.dimension_semantics<parallel>], iteration_bounds = array<i64: 1>, scalar_prefetch = 0 : i64, scratch_operands = 0 : i64, tpu.core_type = #tpu.core_type<tc>, window_params = [{transform_indices = @transform_0, window_bounds = array<i64: 8, 16>}, {pipeline_mode = #tpu.pipeline_mode<synchronous>, transform_indices = @transform_1, window_bounds = array<i64: 16, 32>}, {pipeline_mode = #tpu.pipeline_mode<synchronous>, transform_indices = @transform_2, window_bounds = array<i64: 1, 32>}, {pipeline_mode = #tpu.pipeline_mode<synchronous>, transform_indices = @transform_3, window_bounds = array<i64: 32, 32>}, {pipeline_mode = #tpu.pipeline_mode<synchronous>, transform_indices = @transform_4, window_bounds = array<i64: 1, 32>}, {pipeline_mode = #tpu.pipeline_mode<synchronous>, transform_indices = @transform_5, window_bounds = array<i64: 32, 4>}, {pipeline_mode = #tpu.pipeline_mode<synchronous>, transform_indices = @transform_6, window_bounds = array<i64: 1, 4>}, {transform_indices = @transform_7, window_bounds = array<i64: 8, 4>}]} {
    %c0 = arith.constant 0 : index
    %c0_0 = arith.constant 0 : index
    %0 = vector.load %arg1[%c0, %c0_0] : memref<8x16xf32, #tpu.memory_space<vmem>>, vector<8x16xf32>
    %c0_1 = arith.constant 0 : index
    %c0_2 = arith.constant 0 : index
    %1 = vector.load %arg2[%c0_1, %c0_2] : memref<16x32xf32, #tpu.memory_space<vmem>>, vector<16x32xf32>
    %cst = arith.constant dense<0.000000e+00> : vector<8x32xf32>
    %2 = tpu.matmul %0, %1, %cst {dimension_numbers = #tpu.dot_dimension_numbers<[1], [0], [0], [1], [0, 0, 1, 1], [], []>} : vector<8x16xf32>, vector<16x32xf32>, vector<8x32xf32> -> vector<8x32xf32>
    %c0_3 = arith.constant 0 : index
    %c0_4 = arith.constant 0 : index
    %3 = vector.load %arg3[%c0_3, %c0_4] : memref<1x32xf32, #tpu.memory_space<vmem>>, vector<1x32xf32>
    %4 = vector.broadcast %3 : vector<1x32xf32> to vector<8x32xf32>
    %5 = arith.addf %2, %4 : vector<8x32xf32>
    %cst_5 = arith.constant 0.000000e+00 : f32
    %6 = vector.broadcast %cst_5 : f32 to vector<8x32xf32>
    %7 = arith.maximumf %5, %6 : vector<8x32xf32>
    %c0_6 = arith.constant 0 : index
    %c0_7 = arith.constant 0 : index
    %8 = vector.load %arg4[%c0_6, %c0_7] : memref<32x32xf32, #tpu.memory_space<vmem>>, vector<32x32xf32>
    %cst_8 = arith.constant dense<0.000000e+00> : vector<8x32xf32>
    %9 = tpu.matmul %7, %8, %cst_8 {dimension_numbers = #tpu.dot_dimension_numbers<[1], [0], [0], [1], [0, 0, 1, 1], [], []>} : vector<8x32xf32>, vector<32x32xf32>, vector<8x32xf32> -> vector<8x32xf32>
    %c0_9 = arith.constant 0 : index
    %c0_10 = arith.constant 0 : index
    %10 = vector.load %arg5[%c0_9, %c0_10] : memref<1x32xf32, #tpu.memory_space<vmem>>, vector<1x32xf32>
    %11 = vector.broadcast %10 : vector<1x32xf32> to vector<8x32xf32>
    %12 = arith.addf %9, %11 : vector<8x32xf32>
    %cst_11 = arith.constant 0.000000e+00 : f32
    %13 = vector.broadcast %cst_11 : f32 to vector<8x32xf32>
    %14 = arith.maximumf %12, %13 : vector<8x32xf32>
    %c0_12 = arith.constant 0 : index
    %c0_13 = arith.constant 0 : index
    %15 = vector.load %arg6[%c0_12, %c0_13] : memref<32x4xf32, #tpu.memory_space<vmem>>, vector<32x4xf32>
    %cst_14 = arith.constant dense<0.000000e+00> : vector<8x4xf32>
    %16 = tpu.matmul %14, %15, %cst_14 {dimension_numbers = #tpu.dot_dimension_numbers<[1], [0], [0], [1], [0, 0, 1, 1], [], []>} : vector<8x32xf32>, vector<32x4xf32>, vector<8x4xf32> -> vector<8x4xf32>
    %c0_15 = arith.constant 0 : index
    %c0_16 = arith.constant 0 : index
    %17 = vector.load %arg7[%c0_15, %c0_16] : memref<1x4xf32, #tpu.memory_space<vmem>>, vector<1x4xf32>
    %18 = vector.broadcast %17 : vector<1x4xf32> to vector<8x4xf32>
    %19 = arith.addf %16, %18 : vector<8x4xf32>
    %cst_17 = arith.constant 5.000000e-01 : f32
    %20 = vector.broadcast %cst_17 : f32 to vector<8x4xf32>
    %21 = arith.mulf %20, %19 : vector<8x4xf32>
    %22 = math.tanh %21 : vector<8x4xf32>
    %cst_18 = arith.constant 5.000000e-01 : f32
    %23 = vector.broadcast %cst_18 : f32 to vector<8x4xf32>
    %24 = arith.mulf %23, %22 : vector<8x4xf32>
    %cst_19 = arith.constant 5.000000e-01 : f32
    %25 = vector.broadcast %cst_19 : f32 to vector<8x4xf32>
    %26 = arith.addf %24, %25 : vector<8x4xf32>
    %c0_20 = arith.constant 0 : index
    %c0_21 = arith.constant 0 : index
    %27 = vector.load %arg8[%c0_20, %c0_21] : memref<8x4xf32, #tpu.memory_space<vmem>>, vector<8x4xf32>
    tpu.vector_store %arg8[%c0_20, %c0_21], %26 {strides = array<i32>} : memref<8x4xf32, #tpu.memory_space<vmem>>, vector<8x4xf32>,
    return
  }
  func.func @transform_0(%arg0: i32) -> (i32, i32) {
    %c0_i32 = arith.constant 0 : i32
    %c0_i32_0 = arith.constant 0 : i32
    return %arg0, %c0_i32 : i32, i32
  }
  func.func @transform_1(%arg0: i32) -> (i32, i32) {
    %c0_i32 = arith.constant 0 : i32
    %c0_i32_0 = arith.constant 0 : i32
    %c0_i32_1 = arith.constant 0 : i32
    return %c0_i32, %c0_i32_0 : i32, i32
  }
  func.func @transform_2(%arg0: i32) -> (i32, i32) {
    %c0_i32 = arith.constant 0 : i32
    %c0_i32_0 = arith.constant 0 : i32
    %c0_i32_1 = arith.constant 0 : i32
    return %c0_i32, %c0_i32_0 : i32, i32
  }
  func.func @transform_3(%arg0: i32) -> (i32, i32) {
    %c0_i32 = arith.constant 0 : i32
    %c0_i32_0 = arith.constant 0 : i32
    %c0_i32_1 = arith.constant 0 : i32
    return %c0_i32, %c0_i32_0 : i32, i32
  }
  func.func @transform_4(%arg0: i32) -> (i32, i32) {
    %c0_i32 = arith.constant 0 : i32
    %c0_i32_0 = arith.constant 0 : i32
    %c0_i32_1 = arith.constant 0 : i32
    return %c0_i32, %c0_i32_0 : i32, i32
  }
  func.func @transform_5(%arg0: i32) -> (i32, i32) {
    %c0_i32 = arith.constant 0 : i32
    %c0_i32_0 = arith.constant 0 : i32
    %c0_i32_1 = arith.constant 0 : i32
    return %c0_i32, %c0_i32_0 : i32, i32
  }
  func.func @transform_6(%arg0: i32) -> (i32, i32) {
    %c0_i32 = arith.constant 0 : i32
    %c0_i32_0 = arith.constant 0 : i32
    %c0_i32_1 = arith.constant 0 : i32
    return %c0_i32, %c0_i32_0 : i32, i32
  }
  func.func @transform_7(%arg0: i32) -> (i32, i32) {
    %c0_i32 = arith.constant 0 : i32
    %c0_i32_0 = arith.constant 0 : i32
    return %arg0, %c0_i32 : i32, i32
  }
}

</mosaic_0001>

<bundles_post_ra>
// kernel: _lambda_.1
= control target key start
LH: loop header
LB: loop body
LE: loop exit
PB: predicated region body
PF: predicated region fallthrough
CT: control target
= control target key end

     0   :  { %12 = vsyncpa [#allocation3], 0  ;;  %s577_s0 = inlined_call_operand.hbm [shape: f32[8,16], index: 0, kind: input, shape index: {}]   ;;  %s578_s1 = inlined_call_operand.hbm [shape: f32[16,32], index: 1, kind: input, shape index: {}]   ;;  %s579_s2 = inlined_call_operand.vmem [shape: f32[1,32], index: 2, kind: input, shape index: {}]   ;;  %s580_s3 = inlined_call_operand.hbm [shape: f32[32,32], index: 3, kind: input, shape index: {}]   ;;  %s581_s4 = inlined_call_operand.vmem [shape: f32[1,32], index: 4, kind: input, shape index: {}]   ;;  %s582_s5 = inlined_call_operand.hbm [shape: f32[32,4], index: 5, kind: input, shape index: {}]   ;;  %s583_s6 = inlined_call_operand.vmem [shape: f32[1,4], index: 6, kind: input, shape index: {}]   ;;  %s584_s7 = inlined_call_operand.vmem [shape: f32[8,4], index: 7, kind: output, shape index: {}]  }
   0x1   :  { %13 = vsyncpa [#allocation5], 0 }
   0x2   :  { %14 = vsyncpa [#allocation8], 0  ;;  %s491_s24 = smov [#allocation4]  }
   0x3   :  { %s30_s25 = sshll.u32 %s491_s24, 4  ;;  %s31_s25 = int_to_ptr.vmem [resolvable:$true] %s30_s25 }
   0x4   :  { %s413_s26 = scalar_lea.vmem %s31_s25, 256  ;;  %p418_p1 = scmp.lt.s32.totalorder %s31_s25, %s31_s25 }
   0x5   :  { %p414_p0 = scmp.ne.s32.totalorder %s31_s25, %s413_s26  ;;  %p419_p2 = scmp.lt.s32.totalorder %s413_s26, %s413_s26 }
   0x7   :  { %p420_p3 = por %p419_p2, %p418_p1 }
   0x9   :  { %p421_p4 = pnand %p420_p3, %p414_p0 }
   0xb   :  { %424 = shalt.err (!%p421_p4)
}
   0xc   :  { %s492_s27 = smov 128   ;;  %s493_s28 = smov 8  }
   0xd   :  { %36 = dma.hbm_to_vmem [thread:$0]  %s578_s1, 256, %s31_s25, [#allocation5], %s492_s27, %s492_s27, %s493_s28  }
   0xe   :  { %s494_s8 = smov [#allocation2]   ;;  %s495_s10 = smov [#allocation6]  }
   0xf   :  { %s21_s9 = sshll.u32 %s494_s8, 4  ;;  %s44_s11 = sshll.u32 %s495_s10, 4  ;;  %s22_s9 = int_to_ptr.vmem [resolvable:$true] %s21_s9  ;;  %s45_s11 = int_to_ptr.vmem [resolvable:$true] %s44_s11 }
  0x10   :  { %s433_s12 = scalar_lea.vmem %s22_s9, 128  ;;  %p438_p6 = scmp.lt.s32.totalorder %s22_s9, %s22_s9 }
  0x11   :  { %p434_p5 = scmp.ne.s32.totalorder %s22_s9, %s433_s12  ;;  %p439_p7 = scmp.lt.s32.totalorder %s433_s12, %s433_s12 }
  0x13   :  { %p440_p8 = por %p439_p7, %p438_p6 }
  0x15   :  { %p441_p9 = pnand %p440_p8, %p434_p5 }
  0x17   :  { %444 = shalt.err (!%p441_p9)
}
  0x18   :  { %24 = dma.hbm_to_vmem [thread:$0]  %s577_s0, 128, %s22_s9, [#allocation3]  }
  0x19   :  { %s453_s15 = scalar_lea.vmem %s45_s11, 512  ;;  %p458_p11 = scmp.lt.s32.totalorder %s45_s11, %s45_s11 }
  0x1a   :  { %p454_p10 = scmp.ne.s32.totalorder %s45_s11, %s453_s15  ;;  %p459_p12 = scmp.lt.s32.totalorder %s453_s15, %s453_s15 }
  0x1c   :  { %p460_p13 = por %p459_p12, %p458_p11 }
  0x1e   :  { %p461_p0 = pnand %p460_p13, %p454_p10 }
  0x20   :  { %464 = shalt.err (!%p461_p0)
}
  0x21   :  { %50 = dma.hbm_to_vmem [thread:$0]  %s580_s3, 512, %s45_s11, [#allocation5], %s492_s27, %s492_s27, %s493_s28  }
  0x22   :  { %s496_s17 = smov [#allocation7]  }
  0x23   :  { %s58_s18 = sshll.u32 %s496_s17, 4  ;;  %s59_s18 = int_to_ptr.vmem [resolvable:$true] %s58_s18 }
  0x24   :  { %s473_s19 = scalar_lea.vmem %s59_s18, 512  ;;  %p478_p2 = scmp.lt.s32.totalorder %s59_s18, %s59_s18 }
  0x25   :  { %p474_p1 = scmp.ne.s32.totalorder %s59_s18, %s473_s19  ;;  %p479_p3 = scmp.lt.s32.totalorder %s473_s19, %s473_s19 }
  0x27   :  { %p480_p4 = por %p479_p3, %p478_p2 }
  0x29   :  { %p481_p5 = pnand %p480_p4, %p474_p1 }
  0x2b   :  { %484 = shalt.err (!%p481_p5)
}
  0x2c   :  { %64 = dma.hbm_to_vmem [thread:$0]  %s582_s5, 512, %s59_s18, [#allocation8], %s492_s27, %s492_s27, %s493_s28  }
  0x2d   :  { %485 = dma.done.wait [#allocation3], 128  }
  0x2e   :  { %486 = vsyncadd [#allocation3], 4294967168 }
  0x2f   :  { %487 = dma.done.wait [#allocation5], 768  }
  0x30   :  { %488 = vsyncadd [#allocation5], 4294966528 }
  0x31   :  { %489 = dma.done.wait [#allocation8], 512  }
  0x32   :  { %490 = vsyncadd [#allocation8], 4294966784  ;;  %v497_v0 = vmov 0.0   ;;  %vm498_vm0 = vmmov 0   ;;  %v81_v1 = vld [vmem:[#allocation4 + $0x8] sm:$0xff]  ;;  %v80_v2 = vld [vmem:[#allocation4] sm:$0xff] }
  0x33   :  { %366 = vmatprep.subr.mxu0 %v497_v0  ;;  %370 = vmatprep.mubr.msk.f32.mxu0 %vm498_vm0, %v497_v0  ;;  %v79_v3 = vld [vmem:[#allocation2] sm:$0xff]  ;;  %vm89_vm1 = vcmask 130048   ;;  %v167_v4 = vld [vmem:[#allocation6 + $0x18] sm:$0xff]  ;;  %v166_v5 = vld [vmem:[#allocation6 + $0x10] sm:$0xff]  ;;  %vm175_vm2 = vcmask 261120   ;;  %vm338_vm3 = vcmask 31744  }
  0x34   :  { %373 = vmatprep.subr.mxu1 %v497_v0  ;;  %381 = vmatprep.mubr.msk.f32.mxu1 %vm498_vm0, %v497_v0  ;;  %v165_v6 = vld [vmem:[#allocation6 + $0x8] sm:$0xff]  ;;  %v164_v7 = vld [vmem:[#allocation6] sm:$0xff]  ;;  %v253_v8 = vld [vmem:[#allocation7 + $0x18] sm:$0xff] }
  0x35   :  { %367 = vmatpush3.msra.mxu0 %v81_v1  ;;  %374 = vmatpush3.msra.mxu1 %v167_v4  ;;  %v347_v9 = vld [vmem:[%s579_s2] ss:$0 sm:$0xff]  ;;  %v252_v14 = vld [vmem:[#allocation7 + $0x10] sm:$0xff]  ;;  %v250_v16 = vld [vmem:[#allocation7] sm:$0xff] }
  0x36   :  { %368 = vmatprep.subr.mxu0 %v497_v0  ;;  %375 = vmatprep.subr.mxu1 %v497_v0  ;;  %v251_v15 = vld [vmem:[#allocation7 + $0x8] sm:$0xff] }
  0x37   :  { %369 = vmatpush3.msra.mxu0 %v80_v2  ;;  %376 = vmatpush3.msra.mxu1 %v166_v5  ;;  %v349_v17 = vld [vmem:[%s581_s4] ss:$0 sm:$0xff] }
  0x38   :  { %371 = vmatmul.mubr.msk.f32.vlgmr.msra.gmra.mxu0 %vm89_vm1, %v79_v3  ;;  %384 = vmatprep.subr.mxu0 %v497_v0  ;;  %v351_v22 = vld [vmem:[%s583_s6] ss:$0 sm:$0xff] }
  0x39   :  { %392 = vmatprep.mubr.msk.f32.mxu0 %vm498_vm0, %v497_v0  ;;  %377 = vmatprep.subr.mxu1 %v497_v0 }
  0x3a   :  { %378 = vmatpush3.msra.mxu1 %v165_v6  ;;  %385 = vmatpush3.msra.mxu0 %v253_v8 }
  0x3b   :  { %379 = vmatprep.subr.mxu1 %v497_v0  ;;  %386 = vmatprep.subr.mxu0 %v497_v0 }
  0x3c   :  { %380 = vmatpush3.msra.mxu1 %v164_v7  ;;  %387 = vmatpush3.msra.mxu0 %v252_v14 }
  0x3d   :  { %388 = vmatprep.subr.mxu0 %v497_v0 }
  0x3e   :  { %389 = vmatpush3.msra.mxu0 %v251_v15 }
  0x3f   :  { %390 = vmatprep.subr.mxu0 %v497_v0 }
  0x40   :  { %391 = vmatpush3.msra.mxu0 %v250_v16 }
  0xf8   :  { %v159_v10 = vpop.f32.mrf.mxu0 }
  0xf9   :  { %v160_v11 = vadd.f32 %v347_v9, %v159_v10 }
  0xfa   :  { %v372_v12 = vpop.f32.mrf.mxu0 }
  0xfb   :  { %v163_v13 = vmax.f32 %v160_v11, 0.0 }
  0xfd   :  { %382 = vmatmul.mubr.msk.f32.vlgmr.msra.gmra.mxu1 %vm175_vm2, %v163_v13 }
 0x1bd   :  { %v245_v18 = vpop.f32.mrf.mxu1 }
 0x1be   :  { %v246_v19 = vadd.f32 %v349_v17, %v245_v18 }
 0x1bf   :  { %v383_v20 = vpop.f32.mrf.mxu1 }
 0x1c0   :  { %v249_v21 = vmax.f32 %v246_v19, 0.0 }
 0x1c2   :  { %393 = vmatmul.mubr.msk.f32.vlgmr.msra.gmra.mxu0 %vm175_vm2, %v249_v21 }
 0x282   :  { %v330_v23 = vpop.f32.mrf.mxu0 }
 0x283   :  { %v331_v24 = vadd.f32 %v351_v22, %v330_v23 }
 0x284   :  { %v394_v25 = vpop.f32.mrf.mxu0 }
 0x285   :  { %v334_v26 = vmul.f32 0.5, %v331_v24 }
 0x287   :  { %403 = vtanh.f32 %v334_v26 }
 0x294   :  { %v404_v27 = vpop.eup %403 }
 0x295   :  { %v336_v28 = vmul.f32 0.5, %v404_v27 }
 0x297   :  { %v337_v29 = vadd.f32 0.5, %v336_v28 }
 0x299   :  { %339 = vst.msk [vmem:[%s584_s7] sm:$0xff] %vm338_vm3, %v337_v29 }
 0x29a   :  { %344 = vsyncpa [#allocation3], 1 }
 0x29b   :  { %345 = vsyncpa [#allocation5], 1 }
 0x29c   :  { %346 = vsyncpa [#allocation8], 1 }

</bundles_post_ra>
